<compile_context>
chip_gen: v6e
topology: v6e:2x2x1
jax: 0.10.0
libtpu: 0.0.40
codegen_flags: <defaults>
</compile_context>

<pallas_src>
import jax
import jax.numpy as jnp
from jax.experimental import pallas as pl
from jax.experimental.pallas import tpu as pltpu


_LANE_CANDIDATES = (1024, 512, 256, 128)
_TARGET_BLOCK_BYTES = 4 * 1024 * 1024  # per-buffer tile; ~16 MiB with double-buffered in+out


def _leaky_relu_kernel(x_ref, o_ref):
    x = x_ref[...]
    o_ref[...] = jnp.where(x >= 0, x, jnp.asarray(0.01, x.dtype) * x)


def _tanh_kernel(x_ref, o_ref):
    o_ref[...] = jnp.tanh(x_ref[...])


def _sublane_multiple(itemsize):
    # f32 -> 8, bf16 -> 16, int8/fp8 -> 32 (sub-32-bit dtypes pack along sublanes).
    return max(8, 8 * (4 // max(1, itemsize)))


def _pick_block_rows(rows, lanes, itemsize):
    sub = _sublane_multiple(itemsize)
    target = max(sub, _TARGET_BLOCK_BYTES // (lanes * itemsize))
    if target >= rows:
        return rows  # single full-extent block
    block_rows = target - (target % sub)
    if block_rows <= 0:
        return rows
    # Prefer an exact divisor of `rows` near the target so every grid step writes a
    # full (unmasked) tile.  Cheap host-side search over sublane-aligned candidates.
    best = None
    cand = block_rows
    while cand >= sub:
        if rows % cand == 0:
            best = cand
            break
        cand -= sub
    return best if best is not None and best >= block_rows // 2 else block_rows


def _run_2d(kernel, x2):
    rows, lanes = x2.shape
    block_rows = _pick_block_rows(rows, lanes, x2.dtype.itemsize)
    grid = (pl.cdiv(rows, block_rows),)
    return pl.pallas_call(
        kernel,
        out_shape=jax.ShapeDtypeStruct(x2.shape, x2.dtype),
        grid=grid,
        in_specs=[pl.BlockSpec((block_rows, lanes), lambda i: (i, 0))],
        out_specs=pl.BlockSpec((block_rows, lanes), lambda i: (i, 0)),
        compiler_params=pltpu.CompilerParams(dimension_semantics=("parallel",)),
    )(x2)


def complex_activation(x, is_last=False):
    """x: (B, 2, C, H, W). Returns same shape/dtype as x."""
    assert x.ndim >= 2 and x.shape[1] == 2, "dim 1 must be the (real, imag) axis"
    kernel = _tanh_kernel if is_last else _leaky_relu_kernel

    orig_shape = x.shape
    n = x.size

    lanes = next((c for c in _LANE_CANDIDATES if n % c == 0), None)
    if lanes is not None:
        rows = n // lanes
        out = _run_2d(kernel, x.reshape(rows, lanes))
        return out.reshape(orig_shape)

    # Fallback (element count not a multiple of 128): pad the flat array to a
    # lane-dense multiple; act(0) == 0 for both LeakyReLU and Tanh, so the padded
    # tail is harmless and gets sliced off.
    lanes = 128
    n_pad = pl.cdiv(n, lanes) * lanes
    xf = jnp.pad(x.reshape(-1), (0, n_pad - n))
    out = _run_2d(kernel, xf.reshape(n_pad // lanes, lanes))
    return out.reshape(-1)[:n].reshape(orig_shape)


def _reference(x, is_last=False):
    real = x[:, 0, ...]
    imag = x[:, 1, ...]
    if is_last:
        real, imag = jnp.tanh(real), jnp.tanh(imag)
    else:
        real = jnp.where(real >= 0, real, 0.01 * real)
        imag = jnp.where(imag >= 0, imag, 0.01 * imag)
    return jnp.stack((real, imag), axis=1)


if __name__ == "__main__":
    key = jax.random.PRNGKey(0)
    B, C, H, W = 2, 4, 16, 16
    x = jax.random.normal(key, (B, 2, C, H, W), dtype=jnp.float32)

    ok = True
    for is_last in (False, True):
        out = complex_activation(x, is_last=is_last)
        out = jax.block_until_ready(out)
        ref = _reference(x, is_last=is_last)
        ok &= bool(jnp.allclose(out, ref, atol=1e-6, rtol=1e-6))
        ok &= out.shape == x.shape and out.dtype == x.dtype

    if ok:
        print("KERNEL_OK")
    else:
        print("KERNEL_MISMATCH")
</pallas_src>

<mosaic_0001>
module attributes {stable_mosaic.version = 11 : i64} {
  func.func @_leaky_relu_kernel(%arg0: i32, %arg1: memref<4x1024xf32, #tpu.memory_space<vmem>>, %arg2: memref<4x1024xf32, #tpu.memory_space<vmem>>) attributes {dimension_semantics = [#tpu.dimension_semantics<parallel>], iteration_bounds = array<i64: 1>, scalar_prefetch = 0 : i64, scratch_operands = 0 : i64, tpu.core_type = #tpu.core_type<tc>, window_params = [{transform_indices = @transform_0, window_bounds = array<i64: 4, 1024>}, {transform_indices = @transform_1, window_bounds = array<i64: 4, 1024>}]} {
    %c0 = arith.constant 0 : index
    %c0_0 = arith.constant 0 : index
    %0 = vector.load %arg1[%c0, %c0_0] : memref<4x1024xf32, #tpu.memory_space<vmem>>, vector<4x1024xf32>
    %cst = arith.constant 0.000000e+00 : f32
    %1 = vector.broadcast %cst : f32 to vector<4x1024xf32>
    %2 = arith.cmpf oge, %0, %1 : vector<4x1024xf32>
    %cst_1 = arith.constant 0.00999999977 : f32
    %3 = vector.broadcast %cst_1 : f32 to vector<4x1024xf32>
    %4 = arith.mulf %3, %0 : vector<4x1024xf32>
    %5 = arith.select %2, %0, %4 : vector<4x1024xi1>, vector<4x1024xf32>
    %c0_2 = arith.constant 0 : index
    %c0_3 = arith.constant 0 : index
    %6 = vector.load %arg2[%c0_2, %c0_3] : memref<4x1024xf32, #tpu.memory_space<vmem>>, vector<4x1024xf32>
    tpu.vector_store %arg2[%c0_2, %c0_3], %5 {strides = array<i32>} : memref<4x1024xf32, #tpu.memory_space<vmem>>, vector<4x1024xf32>,
    return
  }
  func.func @transform_0(%arg0: i32) -> (i32, i32) {
    %c0_i32 = arith.constant 0 : i32
    %c0_i32_0 = arith.constant 0 : i32
    return %arg0, %c0_i32 : i32, i32
  }
  func.func @transform_1(%arg0: i32) -> (i32, i32) {
    %c0_i32 = arith.constant 0 : i32
    %c0_i32_0 = arith.constant 0 : i32
    return %arg0, %c0_i32 : i32, i32
  }
}

</mosaic_0001>

<bundles_post_ra>
// kernel: tpu_custom_call.1
= control target key start
LH: loop header
LB: loop body
LE: loop exit
PB: predicated region body
PF: predicated region fallthrough
CT: control target
= control target key end

     0   :  { %6 = vsyncpa [#allocation3], 0  ;;  %s120_s0 = inlined_call_operand.hbm [shape: f32[4,1024], index: 0, kind: input, shape index: {}]   ;;  %s121_s1 = inlined_call_operand.hbm [shape: f32[4,1024], index: 1, kind: output, shape index: {}]  }
   0x1   :  { %7 = vsyncpa [#allocation4], 0  ;;  %s102_s6 = smov [#allocation2]  }
   0x2   :  { %s14_s7 = sshll.u32 %s102_s6, 4  ;;  %s15_s7 = int_to_ptr.vmem [resolvable:$true] %s14_s7 }
   0x3   :  { %s66_s8 = scalar_lea.vmem %s15_s7, 512  ;;  %p71_p1 = scmp.lt.s32.totalorder %s15_s7, %s15_s7 }
   0x4   :  { %p67_p0 = scmp.ne.s32.totalorder %s15_s7, %s66_s8  ;;  %p72_p2 = scmp.lt.s32.totalorder %s66_s8, %s66_s8 }
   0x6   :  { %p73_p3 = por %p72_p2, %p71_p1 }
   0x8   :  { %p74_p4 = pnand %p73_p3, %p67_p0 }
   0xa   :  { %77 = shalt.err (!%p74_p4)
}
   0xb   :  { %17 = dma.hbm_to_vmem [thread:$0]  %s120_s0, 512, %s15_s7, [#allocation3]  }
   0xc   :  { %98 = dma.done.wait [#allocation3], 512  }
   0xd   :  { %99 = vsyncadd [#allocation3], 4294966784  ;;  %v21_v0 = vld [vmem:[#allocation2] sm:$0xff]  ;;  %v22_v1 = vld [vmem:[#allocation2 + $0x8] sm:$0xff]  ;;  %s103_s11 = smov [#allocation5]  }
   0xe   :  { %v23_v2 = vld [vmem:[#allocation2 + $0x10] sm:$0xff]  ;;  %s47_s12 = sshll.u32 %s103_s11, 4  ;;  %vm25_vm0 = vcmp.ge.f32.partialorder %v21_v0, 0.0  ;;  %v29_v3 = vmul.f32 0.01, %v21_v0  ;;  %vm26_vm1 = vcmp.ge.f32.partialorder %v22_v1, 0.0  ;;  %s48_s12 = int_to_ptr.vmem [resolvable:$true] %s47_s12 }
   0xf   :  { %v30_v4 = vmul.f32 0.01, %v22_v1  ;;  %vm27_vm2 = vcmp.ge.f32.partialorder %v23_v2, 0.0  ;;  %v31_v5 = vmul.f32 0.01, %v23_v2  ;;  %v24_v6 = vld [vmem:[#allocation2 + $0x18] sm:$0xff]  ;;  %p83_p6 = scmp.lt.s32.totalorder %s48_s12, %s48_s12 }
  0x10   :  { %v33_v7 = vsel %vm25_vm0, %v21_v0, %v29_v3  ;;  %vm28_vm3 = vcmp.ge.f32.partialorder %v24_v6, 0.0  ;;  %v32_v9 = vmul.f32 0.01, %v24_v6  ;;  %s78_s0 = scalar_lea.vmem %s48_s12, 512 }
  0x11   :  { %v34_v8 = vsel %vm26_vm1, %v22_v1, %v30_v4  ;;  %37 = vst [vmem:[#allocation5] sm:$0xff] %v33_v7  ;;  %v35_v10 = vsel %vm27_vm2, %v23_v2, %v31_v5  ;;  %p79_p5 = scmp.ne.s32.totalorder %s48_s12, %s78_s0  ;;  %p84_p7 = scmp.lt.s32.totalorder %s78_s0, %s78_s0 }
  0x12   :  { %38 = vst [vmem:[#allocation5 + $0x8] sm:$0xff] %v34_v8  ;;  %39 = vst [vmem:[#allocation5 + $0x10] sm:$0xff] %v35_v10  ;;  %v36_v11 = vsel %vm28_vm3, %v24_v6, %v32_v9 }
  0x13   :  { %40 = vst [vmem:[#allocation5 + $0x18] sm:$0xff] %v36_v11  ;;  %p85_p8 = por %p84_p7, %p83_p6 }
  0x15   :  { %p86_p9 = pnand %p85_p8, %p79_p5 }
  0x17   :  { %89 = shalt.err (!%p86_p9)
}
  0x18   :  { %50 = dma.vmem_to_hbm [thread:$0]  %s48_s12, 512, %s121_s1, [#allocation4]  }
  0x19   :  { %100 = dma.done.wait [#allocation4], 512  }
  0x1a   :  { %101 = vsyncadd [#allocation4], 4294966784 }
  0x1b   :  { %54 = vsyncpa [#allocation3], 1 }
  0x1c   :  { %55 = vsyncpa [#allocation4], 1 }

</bundles_post_ra>
